<compile_context>
chip_gen: v7x
topology: tpu7x:2x2x1
jax: 0.10.0
libtpu: 0.0.40
codegen_flags: <defaults>
</compile_context>

<pallas_src>
import jax
import jax.numpy as jnp
from jax.experimental import pallas as pl
from jax.experimental.pallas import tpu as pltpu


def _margin_kernel(x_ref, o_ref):
    # x_ref: (TM, N) tile in VMEM; o_ref: (TM, 1) tile in VMEM (float32).
    x = x_ref[...]
    if not jnp.issubdtype(x.dtype, jnp.floating):
        x = x.astype(jnp.float32)
    # Reductions / compares / selects stay in the input dtype (bf16 rows stay
    # sublane-packed on v6e/v7x); only the exp path upcasts to f32.

    # Largest logit per row.
    m1 = jnp.max(x, axis=-1, keepdims=True)                           # (TM, 1)

    # topk tie semantics via a tie count (no iota / argmax passes):
    # if the max occurs >= 2 times, the second-largest equals the max.
    eq = x == m1                                                      # (TM, N)
    cnt = jnp.sum(eq.astype(jnp.int32), axis=-1, keepdims=True)       # (TM, 1)
    m2_excl = jnp.max(jnp.where(eq, -jnp.inf, x), axis=-1, keepdims=True)
    m2 = jnp.where(cnt >= 2, m1, m2_excl)                             # (TM, 1)

    # Stable softmax normalizer; upcast only inside the exp (EUP) path.
    z = jnp.sum(jnp.exp((x - m1).astype(jnp.float32)),
                axis=-1, keepdims=True)                               # (TM, 1) f32

    # margin = expm1(m2 - m1) / z.  expm1 computed via tanh (EUP) to avoid
    # cancellation near ties; all (TM, 1) ops, so the cost is negligible.
    d = m2.astype(jnp.float32) - m1.astype(jnp.float32)               # <= 0
    t = jnp.tanh(0.5 * d)
    em1 = (2.0 * t) / (1.0 - t)                                       # == expm1(d)
    o_ref[...] = (em1 / z).astype(o_ref.dtype)


def _round_up(v: int, m: int) -> int:
    return ((v + m - 1) // m) * m


def _cdiv(a: int, b: int) -> int:
    return -(-a // b)


_MIN_TILE_BYTES = 1 << 20   # ~1 MiB tiles amortize the ~0.35 us/step overhead
_TARGET_STEPS = 8           # >= 4 steps per TC on v7x (2 TCs); >= 8 on v5e/v6e


def _vmem_capacity_bytes() -> int:
    try:
        return int(pltpu.get_tpu_info().vmem_capacity_bytes)
    except Exception:
        return 64 * 1024 * 1024  # conservative (v7x-sized) fallback


def _pick_tm(rows: int, n: int, itemsize: int, vmem_limit: int, vmem_cap: int) -> int:
    # Sublane packing minimum: 8 rows (4B), 16 (2B), 32 (1B).
    pack = {4: 8, 2: 16, 1: 32}.get(itemsize, 8)
    rows_ceil = _round_up(rows, pack)
    row_bytes = max(1, n * itemsize)

    # Per-input-buffer cap.  The pipeline double-buffers the input and the exp
    # path needs an f32-sized temp of the tile, so stay well under the scoped
    # limit.  v7x has only 64 MiB VMEM/TC -> small cap; v5e/v6e have 128 MiB
    # and the measured HBM roofline knee sits around 16-32 MiB tiles.
    if vmem_cap <= 64 * 1024 * 1024:
        cap = min(vmem_limit // 8, 4 * 1024 * 1024)
    else:
        cap = min(vmem_limit // 6, 16 * 1024 * 1024)

    tm = max(pack, (cap // row_bytes) // pack * pack)
    tm = min(tm, rows_ceil)

    # Guarantee enough grid steps so the input DMA hides behind compute of the
    # previous tile (and both v7x TensorCores get work), as long as each tile
    # stays >= ~1 MiB.
    while _cdiv(rows_ceil, tm) < _TARGET_STEPS and tm > pack:
        half = max(pack, (tm // 2) // pack * pack)
        if half == tm or half * row_bytes < _MIN_TILE_BYTES:
            break
        tm = half
    return tm


def margin_score(x, *, tm: int | None = None):
    """Margin of softmax(x, axis=1): (2nd-largest prob) - (largest prob) per row.

    x: (B, N) logits.  Returns shape (B,), float32 (small margins would be lost
    to bf16 quantization, so the result is always f32).
    """
    assert x.ndim == 2, "Margin applies softmax over dim=1 of a 2D input"
    rows, n = x.shape
    assert n >= 2, "need at least 2 classes for a top-2 margin"

    itemsize = jnp.dtype(x.dtype).itemsize
    pack = {4: 8, 2: 16, 1: 32}.get(itemsize, 8)

    # Generation-aware VMEM budget (v7x: 64 MiB/TC; v5e/v6e: 128 MiB).
    vmem_cap = _vmem_capacity_bytes()
    vmem_limit = int(min((vmem_cap * 3) // 4, 96 * 1024 * 1024))

    if tm is None:
        tm = _pick_tm(rows, n, itemsize, vmem_limit, vmem_cap)
    else:
        tm = max(pack, _round_up(tm, pack))

    # cdiv grid; the ragged last input block is a clamped DMA (tail rows of the
    # VMEM buffer are undefined but only feed padded output rows), and the
    # output is allocated padded so every store stays in bounds.
    ntiles = _cdiv(rows, tm)
    rows_pad = ntiles * tm

    cost = pl.CostEstimate(
        flops=8 * rows * n,
        transcendentals=rows * n,
        bytes_accessed=rows * n * itemsize + rows_pad * 4,
    )

    # TODO(synk): for vocab-scale N (32K-256K) add a trailing "arbitrary" grid
    # axis over N with carried (m1, m2, cnt, z) VMEM accumulators (online-
    # softmax style) so tm stays large instead of collapsing to sliver tiles.
    # TODO(synk): optional further wins for small-N inputs: lane-dense (1, tm)
    # output blocks (in-kernel transpose) and pipeline_mode=pl.Buffered(3) in
    # the many-small-steps regime on v5e/v6e.
    out = pl.pallas_call(
        _margin_kernel,
        out_shape=jax.ShapeDtypeStruct((rows_pad, 1), jnp.float32),
        grid_spec=pltpu.PrefetchScalarGridSpec(
            num_scalar_prefetch=0,
            grid=(ntiles,),
            in_specs=[pl.BlockSpec((tm, n), lambda i: (i, 0))],
            out_specs=pl.BlockSpec((tm, 1), lambda i: (i, 0)),
        ),
        compiler_params=pltpu.CompilerParams(
            dimension_semantics=("parallel",),
            vmem_limit_bytes=vmem_limit,
        ),
        cost_estimate=cost,
    )(x)

    return out[:rows, 0]


if __name__ == "__main__":
    key = jax.random.PRNGKey(0)
    k0, k1 = jax.random.split(key)

    def reference(x):
        p = jax.nn.softmax(x, axis=1)
        top2, _ = jax.lax.top_k(p, 2)
        return top2[:, 1] - top2[:, 0]

    # 1) Even number of rows.
    B, N = 16, 32
    x = jax.random.normal(k0, (B, N), dtype=jnp.float32)
    out = jax.block_until_ready(margin_score(x))
    assert out.shape == (B,), out.shape
    assert jnp.allclose(out, reference(x), atol=1e-5, rtol=1e-5)

    # 2) Ragged rows (rows % tile != 0) exercise the partial last input block.
    B2 = 13
    x2 = jax.random.normal(k1, (B2, N), dtype=jnp.float32)
    out2 = jax.block_until_ready(margin_score(x2))
    assert out2.shape == (B2,), out2.shape
    assert jnp.allclose(out2, reference(x2), atol=1e-5, rtol=1e-5)

    # 3) Exact ties: torch.topk returns the tied max twice -> margin == 0.
    x3 = jnp.array([[2.0, 2.0, 0.0, -1.0],
                    [0.5, 0.1, 0.5, 0.5],
                    [3.0, 1.0, 2.0, 0.0]], dtype=jnp.float32)
    out3 = jax.block_until_ready(margin_score(x3))
    assert jnp.allclose(out3, reference(x3), atol=1e-5, rtol=1e-5)

    print("KERNEL_OK")
</pallas_src>

<mosaic_0001>
module attributes {stable_mosaic.version = 11 : i64} {
  func.func @_margin_kernel(%arg0: i32, %arg1: memref<16x32xf32, #tpu.memory_space<vmem>>, %arg2: memref<16x1xf32, #tpu.memory_space<vmem>>) attributes {dimension_semantics = [#tpu.dimension_semantics<parallel>], iteration_bounds = array<i64: 1>, scalar_prefetch = 0 : i64, scratch_operands = 0 : i64, tpu.core_type = #tpu.core_type<tc>, window_params = [{transform_indices = @transform_0, window_bounds = array<i64: 16, 32>}, {transform_indices = @transform_1, window_bounds = array<i64: 16, 1>}]} {
    %c0 = arith.constant 0 : index
    %c0_0 = arith.constant 0 : index
    %0 = vector.load %arg1[%c0, %c0_0] : memref<16x32xf32, #tpu.memory_space<vmem>>, vector<16x32xf32>
    %cst = arith.constant dense<0xFF800000> : vector<16xf32>
    %1 = vector.multi_reduction <maximumf>, %0, %cst [1] : vector<16x32xf32> to vector<16xf32>
    %2 = vector.shape_cast %1 : vector<16xf32> to vector<16x1xf32>
    %3 = vector.broadcast %2 : vector<16x1xf32> to vector<16x32xf32>
    %4 = arith.cmpf oeq, %0, %3 : vector<16x32xf32>
    %5 = arith.extui %4 : vector<16x32xi1> to vector<16x32xi32>
    %cst_1 = arith.constant dense<0> : vector<16xi32>
    %6 = vector.multi_reduction <add>, %5, %cst_1 [1] : vector<16x32xi32> to vector<16xi32>
    %7 = vector.shape_cast %6 : vector<16xi32> to vector<16x1xi32>
    %cst_2 = arith.constant 0xFF800000 : f32
    %8 = vector.broadcast %cst_2 : f32 to vector<16x32xf32>
    %9 = arith.select %4, %8, %0 : vector<16x32xi1>, vector<16x32xf32>
    %cst_3 = arith.constant dense<0xFF800000> : vector<16xf32>
    %10 = vector.multi_reduction <maximumf>, %9, %cst_3 [1] : vector<16x32xf32> to vector<16xf32>
    %11 = vector.shape_cast %10 : vector<16xf32> to vector<16x1xf32>
    %c2_i32 = arith.constant 2 : i32
    %12 = vector.broadcast %c2_i32 : i32 to vector<16x1xi32>
    %13 = arith.cmpi sge, %7, %12 : vector<16x1xi32>
    %14 = arith.select %13, %2, %11 : vector<16x1xi1>, vector<16x1xf32>
    %15 = vector.broadcast %2 : vector<16x1xf32> to vector<16x32xf32>
    %16 = arith.subf %0, %15 : vector<16x32xf32>
    %17 = math.exp %16 : vector<16x32xf32>
    %cst_4 = arith.constant dense<0.000000e+00> : vector<16xf32>
    %18 = vector.multi_reduction <add>, %17, %cst_4 [1] : vector<16x32xf32> to vector<16xf32>
    %19 = vector.shape_cast %18 : vector<16xf32> to vector<16x1xf32>
    %20 = arith.subf %14, %2 : vector<16x1xf32>
    %cst_5 = arith.constant 5.000000e-01 : f32
    %21 = vector.broadcast %cst_5 : f32 to vector<16x1xf32>
    %22 = arith.mulf %21, %20 : vector<16x1xf32>
    %23 = math.tanh %22 : vector<16x1xf32>
    %cst_6 = arith.constant 2.000000e+00 : f32
    %24 = vector.broadcast %cst_6 : f32 to vector<16x1xf32>
    %25 = arith.mulf %24, %23 : vector<16x1xf32>
    %cst_7 = arith.constant 1.000000e+00 : f32
    %26 = vector.broadcast %cst_7 : f32 to vector<16x1xf32>
    %27 = arith.subf %26, %23 : vector<16x1xf32>
    %28 = arith.divf %25, %27 : vector<16x1xf32>
    %29 = arith.divf %28, %19 : vector<16x1xf32>
    %c0_8 = arith.constant 0 : index
    %c0_9 = arith.constant 0 : index
    %30 = vector.load %arg2[%c0_8, %c0_9] : memref<16x1xf32, #tpu.memory_space<vmem>>, vector<16x1xf32>
    tpu.vector_store %arg2[%c0_8, %c0_9], %29 {strides = array<i32>} : memref<16x1xf32, #tpu.memory_space<vmem>>, vector<16x1xf32>,
    return
  }
  func.func @transform_0(%arg0: i32) -> (i32, i32) {
    %c0_i32 = arith.constant 0 : i32
    %c0_i32_0 = arith.constant 0 : i32
    return %arg0, %c0_i32 : i32, i32
  }
  func.func @transform_1(%arg0: i32) -> (i32, i32) {
    %c0_i32 = arith.constant 0 : i32
    %c0_i32_0 = arith.constant 0 : i32
    return %arg0, %c0_i32 : i32, i32
  }
}

</mosaic_0001>

<bundles_post_ra>
// kernel: tpu_custom_call.1
= control target key start
LH: loop header
LB: loop body
LE: loop exit
PB: predicated region body
PF: predicated region fallthrough
CT: control target
= control target key end

     0   :  { %6 = vsyncpa [#allocation3], 0  ;;  %s155_s6 = smov [#allocation2]   ;;  %s199_s0 = inlined_call_operand.hbm [shape: f32[16,32], index: 0, kind: input, shape index: {}]   ;;  %s200_s1 = inlined_call_operand.vmem [shape: f32[16,1], index: 1, kind: output, shape index: {}]  }
   0x1   :  { %s12_s7 = sshll.u32 %s155_s6, 4  ;;  %s131_s10 = scalar_lea.hbm %s199_s0, 256  ;;  %s13_s7 = int_to_ptr.vmem [resolvable:$true] %s12_s7 }
   0x2   :  { %p132_p0 = scmp.ne.s32.totalorder %s199_s0, %s131_s10  ;;  %p135_p1 = scmp.lt.u32.totalorder %s131_s10, %s199_s0 }
   0x4   :  { %p137_p2 = pnand %p135_p1, %p132_p0 }
   0x6   :  { %140 = shalt.err (!%p137_p2)
}
   0x7   :  { %s141_s15 = scalar_lea.vmem %s13_s7, 256  ;;  %p146_p4 = scmp.lt.s32.totalorder %s13_s7, %s13_s7 }
   0x8   :  { %p142_p3 = scmp.ne.s32.totalorder %s13_s7, %s141_s15  ;;  %p147_p5 = scmp.lt.s32.totalorder %s141_s15, %s141_s15 }
   0xa   :  { %p148_p6 = por %p147_p5, %p146_p4 }
   0xc   :  { %p149_p7 = pnand %p148_p6, %p142_p3 }
   0xe   :  { %152 = shalt.err (!%p149_p7)
}
   0xf   :  { %s156_s16 = smov 128   ;;  %s157_s17 = smov 8  }
  0x10   :  { %18 = dma.hbm_to_vmem [thread:$0]  %s199_s0, 256, %s13_s7, [#allocation3], %s156_s16, %s156_s16, %s157_s17  }
  0x11   :  { %153 = dma.done.wait [#allocation3], 256  }
  0x12   :  { %154 = vsyncadd [#allocation3], 4294967040  ;;  %vm24_vm0 = vcmask 261120   ;;  %v22_v0 = vld [vmem:[#allocation2] sm:$0xff]  ;;  %v23_v1 = vld [vmem:[#allocation2 + $0x8] sm:$0xff]  ;;  %v158_v6 = vmov 0  }
  0x13   :  { %v25_v2 = vsel %vm24_vm0, %v22_v0, -inf  ;;  %v28_v3 = vsel %vm24_vm0, %v23_v1, -inf  ;;  %vm103_vm5 = vcmask 7168  }
  0x14   :  { %26 = vmax.xlane.f32.xlu0 %v25_v2 }
  0x18   :  { %29 = vmax.xlane.f32.xlu0 %v28_v3 }
  0xa1   :  { %v27_v4 = vpop.xlane.xlu0 %26 }
  0xa2   :  { %v73_v5 = vsub.f32 %v22_v0, %v27_v4  ;;  %vm31_vm1 = vcmp.eq.f32.partialorder %v22_v0, %v27_v4 }
  0xa3   :  { %v33_v7 = vsel %vm31_vm1, 1, %v158_v6  ;;  %v61_v19 = vsel %vm31_vm1, -inf, %v22_v0 }
  0xa4   :  { %v75_v8 = vmul.f32 1.442695, %v73_v5  ;;  %v35_v9 = vsel %vm24_vm0, %v33_v7, 0  ;;  %v63_v23 = vsel %vm24_vm0, %v61_v19, -inf }
  0xa5   :  { %v30_v10 = vpop.xlane.xlu0 %29  ;;  %v37_v11 = vshrl.u32 %v35_v9, 16  ;;  %v36_v12 = vand.u32 65535, %v35_v9 }
  0xa6   :  { %115 = vpow2.f32 %v75_v8  ;;  %v74_v13 = vsub.f32 %v23_v1, %v30_v10  ;;  %vm32_vm2 = vcmp.eq.f32.partialorder %v23_v1, %v30_v10 }
  0xa7   :  { %v39_v14 = vcvt.s32.f32 %v37_v11  ;;  %v38_v15 = vcvt.s32.f32 %v36_v12  ;;  %v34_v16 = vsel %vm32_vm2, 1, %v158_v6  ;;  %v62_v27 = vsel %vm32_vm2, -inf, %v23_v1 }
  0xa8   :  { %v77_v17 = vmul.f32 1.442695, %v74_v13  ;;  %v48_v18 = vsel %vm24_vm0, %v34_v16, 0  ;;  %v66_v28 = vsel %vm24_vm0, %v62_v27, -inf }
  0xa9   :  { %42 = vadd.xlane.f32.xlu1 %v39_v14  ;;  %40 = vadd.xlane.f32.xlu0 %v38_v15  ;;  %v50_v20 = vshrl.u32 %v48_v18, 16  ;;  %v49_v22 = vand.u32 65535, %v48_v18 }
  0xaa   :  { %117 = vpow2.f32 %v77_v17 }
  0xab   :  { %v52_v21 = vcvt.s32.f32 %v50_v20  ;;  %v51_v24 = vcvt.s32.f32 %v49_v22 }
  0xad   :  { %64 = vmax.xlane.f32.xlu0 %v63_v23  ;;  %55 = vadd.xlane.f32.xlu1 %v52_v21 }
  0xb0   :  { %v116_v25 = vpop.eup %115 }
  0xb1   :  { %53 = vadd.xlane.f32.xlu1 %v51_v24  ;;  %v79_v26 = vsel %vm24_vm0, %v116_v25, 0.0 }
  0xb2   :  { %80 = vadd.xlane.f32.xlu0 %v79_v26 }
  0xb4   :  { %v118_v29 = vpop.eup %117 }
  0xb5   :  { %67 = vmax.xlane.f32.xlu1 %v66_v28  ;;  %v82_v30 = vsel %vm24_vm0, %v118_v29, 0.0 }
  0xb9   :  { %83 = vadd.xlane.f32.xlu1 %v82_v30 }
 0x136   :  { %v43_v31 = vpop.xlane.xlu1 %42  ;;  %v41_v32 = vpop.xlane.xlu0 %40 }
 0x137   :  { %v45_v33 = vcvt.f32.s32 %v43_v31  ;;  %v44_v35 = vcvt.f32.s32 %v41_v32 }
 0x139   :  { %v46_v34 = vshll.u32 %v45_v33, 16 }
 0x13a   :  { %v56_v36 = vpop.xlane.xlu1 %55  ;;  %v65_v39 = vpop.xlane.xlu0 %64 }
 0x13b   :  { %v47_v37 = vadd.s32 %v46_v34, %v44_v35  ;;  %v58_v38 = vcvt.f32.s32 %v56_v36 }
 0x13d   :  { %vm69_vm3 = vcmp.ge.s32.totalorder %v47_v37, 2  ;;  %v59_v42 = vshll.u32 %v58_v38, 16 }
 0x13e   :  { %v71_v40 = vsel %vm69_vm3, %v27_v4, %v65_v39  ;;  %v54_v41 = vpop.xlane.xlu1 %53 }
 0x13f   :  { %v85_v43 = vsub.f32 %v71_v40, %v27_v4  ;;  %v57_v44 = vcvt.f32.s32 %v54_v41  ;;  %v81_v53 = vpop.xlane.xlu0 %80 }
 0x141   :  { %v87_v45 = vmul.f32 0.5, %v85_v43  ;;  %v60_v46 = vadd.s32 %v59_v42, %v57_v44 }
 0x142   :  { %v68_v47 = vpop.xlane.xlu1 %67 }
 0x143   :  { %119 = vtanh.f32 %v87_v45  ;;  %vm70_vm4 = vcmp.ge.s32.totalorder %v60_v46, 2 }
 0x144   :  { %v72_v48 = vsel %vm70_vm4, %v30_v10, %v68_v47 }
 0x145   :  { %v86_v49 = vsub.f32 %v72_v48, %v30_v10 }
 0x146   :  { %v84_v56 = vpop.xlane.xlu1 %83 }
 0x147   :  { %v88_v50 = vmul.f32 0.5, %v86_v49 }
 0x149   :  { %121 = vtanh.f32 %v88_v50 }
 0x14d   :  { %v120_v51 = vpop.eup %119 }
 0x14e   :  { %v93_v52 = vsub.f32 1.0, %v120_v51  ;;  %v91_v57 = vmul.f32 2.0, %v120_v51 }
 0x150   :  { %123 = vrcp.f32 %v93_v52 }
 0x151   :  { %125 = vrcp.f32 %v81_v53 }
 0x153   :  { %v122_v54 = vpop.eup %121 }
 0x154   :  { %v94_v55 = vsub.f32 1.0, %v122_v54  ;;  %v92_v62 = vmul.f32 2.0, %v122_v54 }
 0x156   :  { %127 = vrcp.f32 %v94_v55 }
 0x157   :  { %129 = vrcp.f32 %v84_v56 }
 0x15a   :  { %v124_v58 = vpop.eup %123 }
 0x15b   :  { %v96_v59 = vmul.f32 %v124_v58, %v91_v57  ;;  %v126_v60 = vpop.eup %125 }
 0x15d   :  { %v100_v61 = vmul.f32 %v126_v60, %v96_v59 }
 0x15f   :  { %104 = vst.msk [vmem:[%s200_s1] sm:$0xff] %vm103_vm5, %v100_v61 }
 0x160   :  { %v128_v63 = vpop.eup %127 }
 0x161   :  { %v98_v0 = vmul.f32 %v128_v63, %v92_v62  ;;  %v130_v1 = vpop.eup %129 }
 0x163   :  { %v102_v2 = vmul.f32 %v130_v1, %v98_v0 }
 0x165   :  { %105 = vst.msk [vmem:[%s200_s1 + $0x8] sm:$0xff] %vm103_vm5, %v102_v2 }
 0x166   :  { %110 = vsyncpa [#allocation3], 1 }

</bundles_post_ra>
